<compile_context>
chip_gen: v6e
topology: v6e:2x2x1
jax: 0.10.0
libtpu: 0.0.40
codegen_flags: <defaults>
</compile_context>

<pallas_src>
import math
import functools

import jax
import jax.numpy as jnp
from jax.experimental import pallas as pl
from jax.experimental.pallas import tpu as pltpu


# Default tile sizes (sweep per chip: these fit v6e's 128 MiB comfortably;
# on v7x (64 MiB VMEM) halve TK if VMEM pressure shows up).
TM, TN, TK = 256, 256, 512


def _pick_tile(dim, pref, align):
    """Largest tile <= pref that divides dim and is a multiple of `align`
    (or the full dim when dim <= pref / nothing divides)."""
    if dim <= pref:
        return dim
    t = pref
    while t >= align:
        if dim % t == 0:
            return t
        t -= align
    return dim


# ------------------------- Pallas kernels ---------------------------------

def _matmul_kernel(x_ref, w_ref, b_ref, o_ref, acc_ref, *, activation):
    """Tiled GEMM with fp32 accumulator; bias (+ optional GELU) epilogue."""
    @pl.when(pl.program_id(2) == 0)
    def _():
        acc_ref[...] = jnp.zeros_like(acc_ref)

    acc_ref[...] += jnp.dot(x_ref[...], w_ref[...],
                            preferred_element_type=jnp.float32)

    @pl.when(pl.program_id(2) == pl.num_programs(2) - 1)
    def _():
        y = acc_ref[...] + b_ref[...].astype(jnp.float32)
        if activation == "gelu":
            # exact (erf) GELU in f32, matching DistilBERT's activation
            y = 0.5 * y * (1.0 + jax.lax.erf(y * 0.7071067811865476))
        o_ref[...] = y.astype(o_ref.dtype)


def dense(x, w, b, activation=None):
    """y = x @ w + b (optional GELU).  x:[M,K] bf16, w:[K,N] bf16, b:[N] f32."""
    M, K = x.shape
    K2, N = w.shape
    assert K == K2
    tm = _pick_tile(M, TM, 8)
    tn = _pick_tile(N, TN, 128)
    tk = _pick_tile(K, TK, 128)
    grid = (M // tm, N // tn, K // tk)
    itemsize = x.dtype.itemsize
    cost = pl.CostEstimate(
        flops=2 * M * K * N,
        transcendentals=(M * N if activation == "gelu" else 0),
        bytes_accessed=(M * K + K * N + M * N) * itemsize + N * 4,
    )
    return pl.pallas_call(
        functools.partial(_matmul_kernel, activation=activation),
        out_shape=jax.ShapeDtypeStruct((M, N), x.dtype),
        grid=grid,
        in_specs=[
            pl.BlockSpec((tm, tk), lambda i, j, k: (i, k)),
            pl.BlockSpec((tk, tn), lambda i, j, k: (k, j)),
            pl.BlockSpec((1, tn), lambda i, j, k: (0, j)),
        ],
        out_specs=pl.BlockSpec((tm, tn), lambda i, j, k: (i, j)),
        scratch_shapes=[pltpu.VMEM((tm, tn), jnp.float32)],
        compiler_params=pltpu.CompilerParams(
            dimension_semantics=("parallel", "parallel", "arbitrary")),
        cost_estimate=cost,
    )(x, w, b.reshape(1, N))


def _matmul_add_ln_kernel(x_ref, w_ref, b_ref, r_ref, g_ref, bt_ref,
                          o_ref, acc_ref, *, eps):
    """Tiled GEMM; epilogue = bias + residual add + LayerNorm (full row)."""
    @pl.when(pl.program_id(1) == 0)
    def _():
        acc_ref[...] = jnp.zeros_like(acc_ref)

    acc_ref[...] += jnp.dot(x_ref[...], w_ref[...],
                            preferred_element_type=jnp.float32)

    @pl.when(pl.program_id(1) == pl.num_programs(1) - 1)
    def _():
        h = (acc_ref[...] + b_ref[...].astype(jnp.float32)
             + r_ref[...].astype(jnp.float32))
        mu = jnp.mean(h, axis=-1, keepdims=True)
        var = jnp.mean((h - mu) ** 2, axis=-1, keepdims=True)
        y = (h - mu) * jax.lax.rsqrt(var + eps)
        y = y * g_ref[...].astype(jnp.float32) + bt_ref[...].astype(jnp.float32)
        o_ref[...] = y.astype(o_ref.dtype)


def dense_add_layernorm(x, w, b, res, gamma, beta, eps=1e-12):
    """LayerNorm(x @ w + b + res), fused.  Output tile keeps full N rows."""
    M, K = x.shape
    K2, N = w.shape
    assert K == K2 and res.shape == (M, N)
    tm = _pick_tile(M, TM, 8)
    tk = _pick_tile(K, TK, 128)
    grid = (M // tm, K // tk)
    itemsize = x.dtype.itemsize
    cost = pl.CostEstimate(
        flops=2 * M * K * N + 10 * M * N,
        transcendentals=M,
        bytes_accessed=(M * K + K * N + 2 * M * N) * itemsize + 3 * N * 4,
    )
    return pl.pallas_call(
        functools.partial(_matmul_add_ln_kernel, eps=eps),
        out_shape=jax.ShapeDtypeStruct((M, N), x.dtype),
        grid=grid,
        in_specs=[
            pl.BlockSpec((tm, tk), lambda i, k: (i, k)),
            pl.BlockSpec((tk, N), lambda i, k: (k, 0)),
            pl.BlockSpec((1, N), lambda i, k: (0, 0)),
            pl.BlockSpec((tm, N), lambda i, k: (i, 0)),
            pl.BlockSpec((1, N), lambda i, k: (0, 0)),
            pl.BlockSpec((1, N), lambda i, k: (0, 0)),
        ],
        out_specs=pl.BlockSpec((tm, N), lambda i, k: (i, 0)),
        scratch_shapes=[pltpu.VMEM((tm, N), jnp.float32)],
        compiler_params=pltpu.CompilerParams(
            dimension_semantics=("parallel", "arbitrary")),
        cost_estimate=cost,
    )(x, w, b.reshape(1, N), res, gamma.reshape(1, N), beta.reshape(1, N))


def _layernorm_kernel(x_ref, g_ref, b_ref, o_ref, *, eps):
    h = x_ref[...].astype(jnp.float32)
    mu = jnp.mean(h, axis=-1, keepdims=True)
    var = jnp.mean((h - mu) ** 2, axis=-1, keepdims=True)
    y = (h - mu) * jax.lax.rsqrt(var + eps)
    y = y * g_ref[...].astype(jnp.float32) + b_ref[...].astype(jnp.float32)
    o_ref[...] = y.astype(o_ref.dtype)


def layernorm(x, gamma, beta, eps=1e-12):
    """No-residual LayerNorm over last dim.  x:[M,D] bf16."""
    M, D = x.shape
    tm = _pick_tile(M, TM, 8)
    return pl.pallas_call(
        functools.partial(_layernorm_kernel, eps=eps),
        out_shape=jax.ShapeDtypeStruct((M, D), x.dtype),
        grid=(M // tm,),
        in_specs=[
            pl.BlockSpec((tm, D), lambda i: (i, 0)),
            pl.BlockSpec((1, D), lambda i: (0, 0)),
            pl.BlockSpec((1, D), lambda i: (0, 0)),
        ],
        out_specs=pl.BlockSpec((tm, D), lambda i: (i, 0)),
        compiler_params=pltpu.CompilerParams(dimension_semantics=("parallel",)),
    )(x, gamma.reshape(1, D), beta.reshape(1, D))


def _attention_kernel(q_ref, k_ref, v_ref, m_ref, o_ref, *, scale):
    """One (batch, head) tile of masked softmax attention."""
    q = q_ref[0, 0]                                 # [S, Dh] bf16
    k = k_ref[0, 0]                                 # [S, Dh] bf16
    v = v_ref[0, 0]                                 # [S, Dh] bf16
    mask = m_ref[0]                                 # [1, S]  f32 (1 keep, 0 pad)
    scores = jax.lax.dot_general(                   # q @ k^T on the MXU (bf16)
        q, k, (((1,), (1,)), ((), ())),
        preferred_element_type=jnp.float32) * scale  # [S, S] f32
    neg = jnp.finfo(jnp.float32).min
    scores = jnp.where(mask == 0.0, neg, scores)     # masked_fill over keys
    scores = scores - jnp.max(scores, axis=-1, keepdims=True)
    p = jnp.exp(scores)
    inv = pl.reciprocal(jnp.sum(p, axis=-1, keepdims=True), approx=True)
    p = (p * inv).astype(v.dtype)
    ctx = jnp.dot(p, v, preferred_element_type=jnp.float32)   # [S, Dh]
    o_ref[0, 0] = ctx.astype(o_ref.dtype)


def mha_core(q, k, v, mask):
    """q,k,v: [B,H,S,Dh] bf16; mask: [B,1,S] f32 -> context [B,H,S,Dh]."""
    B, H, S, Dh = q.shape
    scale = 1.0 / math.sqrt(Dh)
    qkv_spec = pl.BlockSpec((1, 1, S, Dh), lambda b, h: (b, h, 0, 0))
    itemsize = q.dtype.itemsize
    cost = pl.CostEstimate(
        flops=4 * B * H * S * S * Dh,
        transcendentals=B * H * S * S,
        bytes_accessed=4 * B * H * S * Dh * itemsize + B * S * 4,
    )
    return pl.pallas_call(
        functools.partial(_attention_kernel, scale=scale),
        out_shape=jax.ShapeDtypeStruct((B, H, S, Dh), q.dtype),
        grid=(B, H),
        in_specs=[
            qkv_spec, qkv_spec, qkv_spec,
            pl.BlockSpec((1, 1, S), lambda b, h: (b, 0, 0)),
        ],
        out_specs=pl.BlockSpec((1, 1, S, Dh), lambda b, h: (b, h, 0, 0)),
        compiler_params=pltpu.CompilerParams(
            dimension_semantics=("parallel", "parallel")),
        cost_estimate=cost,
    )(q, k, v, mask)


# ------------------------ parameter construction --------------------------

def init_params(key, cfg):
    D, F = cfg["dim"], cfg["hidden_dim"]
    V, P, L = cfg["vocab_size"], cfg["max_position_embeddings"], cfg["n_layers"]
    keys = jax.random.split(key, 2 + L)

    def w_init(k, din, dout):
        return (jax.random.normal(k, (din, dout), jnp.float32) * 0.02
                ).astype(jnp.bfloat16)

    def b_init(k, dout):
        return jax.random.normal(k, (dout,), jnp.float32) * 0.02

    params = {
        "word_emb": (jax.random.normal(keys[0], (V, D), jnp.float32) * 0.02
                     ).astype(jnp.bfloat16),
        "pos_emb": (jax.random.normal(keys[1], (P, D), jnp.float32) * 0.02
                    ).astype(jnp.bfloat16),
        "emb_ln_g": jnp.ones((D,), jnp.float32),
        "emb_ln_b": jnp.zeros((D,), jnp.float32),
        "layers": [],
    }
    for l in range(L):
        ks = jax.random.split(keys[2 + l], 8)
        params["layers"].append({
            # fused Q/K/V projection: concatenated [D, 3D] weight
            "qkv_w": w_init(ks[0], D, 3 * D),
            "qkv_b": b_init(ks[1], 3 * D),
            "o_w": w_init(ks[2], D, D),
            "o_b": b_init(ks[3], D),
            "sa_ln_g": jnp.ones((D,), jnp.float32),
            "sa_ln_b": jnp.zeros((D,), jnp.float32),
            "ff1_w": w_init(ks[4], D, F),
            "ff1_b": b_init(ks[5], F),
            "ff2_w": w_init(ks[6], F, D),
            "ff2_b": b_init(ks[7], D),
            "out_ln_g": jnp.ones((D,), jnp.float32),
            "out_ln_b": jnp.zeros((D,), jnp.float32),
        })
    return params


# ----------------------------- forward pass --------------------------------

def text_encoder_forward(params, input_ids, attention_mask, cfg):
    B, S = input_ids.shape
    D, H = cfg["dim"], cfg["n_heads"]
    Dh = D // H
    M = B * S

    # Embeddings: word + position gather (JAX glue), then no-residual LayerNorm.
    x = params["word_emb"][input_ids] + params["pos_emb"][:S][None, :, :]
    h = layernorm(x.reshape(M, D), params["emb_ln_g"], params["emb_ln_b"])
    # (dropout is a no-op in eval mode)

    mask = attention_mask.astype(jnp.float32).reshape(B, 1, S)

    for lp in params["layers"]:
        # --- multi-head self attention (fused QKV GEMM) ---
        qkv = dense(h, lp["qkv_w"], lp["qkv_b"])                     # [M, 3D]
        # TODO(synk): head split/merge still goes through XLA transposes; an
        # in-kernel lane-sliced head view would remove these HBM permutes.
        qkv = qkv.reshape(B, S, 3, H, Dh).transpose(2, 0, 3, 1, 4)   # [3,B,H,S,Dh]
        ctx = mha_core(qkv[0], qkv[1], qkv[2], mask)                 # [B,H,S,Dh]
        ctx = ctx.transpose(0, 2, 1, 3).reshape(M, D)
        # o-projection with fused residual add + LayerNorm epilogue
        h = dense_add_layernorm(ctx, lp["o_w"], lp["o_b"], h,
                                lp["sa_ln_g"], lp["sa_ln_b"])

        # --- feed forward: GELU fused into FF1, add+LN fused into FF2 ---
        ff = dense(h, lp["ff1_w"], lp["ff1_b"], activation="gelu")
        h = dense_add_layernorm(ff, lp["ff2_w"], lp["ff2_b"], h,
                                lp["out_ln_g"], lp["out_ln_b"])

    last_hidden_state = h.reshape(B, S, D)
    # TextEncoder.forward: return last_hidden_state[:, target_token_idx(=0), :]
    return last_hidden_state[:, 0, :].astype(jnp.float32)


# --------------------------------- main -------------------------------------

if __name__ == "__main__":
    cfg = dict(
        vocab_size=100,
        max_position_embeddings=32,
        dim=64,
        n_heads=4,
        hidden_dim=128,
        n_layers=2,
    )
    key = jax.random.PRNGKey(0)
    k_params, k_ids = jax.random.split(key)
    params = init_params(k_params, cfg)

    B, S = 2, 16
    input_ids = jax.random.randint(k_ids, (B, S), 0, cfg["vocab_size"],
                                   dtype=jnp.int32)
    attention_mask = jnp.ones((B, S), jnp.int32).at[:, 12:].set(0)  # pad tail

    out = text_encoder_forward(params, input_ids, attention_mask, cfg)
    jax.block_until_ready(out)
    assert out.shape == (B, cfg["dim"]), out.shape
    assert bool(jnp.all(jnp.isfinite(out)))
    print("KERNEL_OK")
</pallas_src>

<mosaic_0001>
module attributes {stable_mosaic.version = 11 : i64} {
  func.func @_layernorm_kernel(%arg0: i32, %arg1: memref<32x64xbf16, #tpu.memory_space<vmem>>, %arg2: memref<1x64xf32, #tpu.memory_space<vmem>>, %arg3: memref<1x64xf32, #tpu.memory_space<vmem>>, %arg4: memref<32x64xbf16, #tpu.memory_space<vmem>>) attributes {dimension_semantics = [#tpu.dimension_semantics<parallel>], iteration_bounds = array<i64: 1>, scalar_prefetch = 0 : i64, scratch_operands = 0 : i64, tpu.core_type = #tpu.core_type<tc>, window_params = [{transform_indices = @transform_0, window_bounds = array<i64: 32, 64>}, {pipeline_mode = #tpu.pipeline_mode<synchronous>, transform_indices = @transform_1, window_bounds = array<i64: 1, 64>}, {pipeline_mode = #tpu.pipeline_mode<synchronous>, transform_indices = @transform_2, window_bounds = array<i64: 1, 64>}, {transform_indices = @transform_3, window_bounds = array<i64: 32, 64>}]} {
    %c0 = arith.constant 0 : index
    %c0_0 = arith.constant 0 : index
    %0 = vector.load %arg1[%c0, %c0_0] : memref<32x64xbf16, #tpu.memory_space<vmem>>, vector<32x64xbf16>
    %1 = arith.extf %0 : vector<32x64xbf16> to vector<32x64xf32>
    %cst = arith.constant dense<0.000000e+00> : vector<32xf32>
    %2 = vector.multi_reduction <add>, %1, %cst [1] : vector<32x64xf32> to vector<32xf32>
    %3 = vector.shape_cast %2 : vector<32xf32> to vector<32x1xf32>
    %cst_1 = arith.constant 6.400000e+01 : f32
    %4 = vector.broadcast %cst_1 : f32 to vector<32x1xf32>
    %5 = arith.divf %3, %4 : vector<32x1xf32>
    %6 = vector.broadcast %5 : vector<32x1xf32> to vector<32x64xf32>
    %7 = arith.subf %1, %6 : vector<32x64xf32>
    %8 = arith.mulf %7, %7 : vector<32x64xf32>
    %cst_2 = arith.constant dense<0.000000e+00> : vector<32xf32>
    %9 = vector.multi_reduction <add>, %8, %cst_2 [1] : vector<32x64xf32> to vector<32xf32>
    %10 = vector.shape_cast %9 : vector<32xf32> to vector<32x1xf32>
    %cst_3 = arith.constant 6.400000e+01 : f32
    %11 = vector.broadcast %cst_3 : f32 to vector<32x1xf32>
    %12 = arith.divf %10, %11 : vector<32x1xf32>
    %13 = vector.broadcast %5 : vector<32x1xf32> to vector<32x64xf32>
    %14 = arith.subf %1, %13 : vector<32x64xf32>
    %cst_4 = arith.constant 9.99999996E-13 : f32
    %15 = vector.broadcast %cst_4 : f32 to vector<32x1xf32>
    %16 = arith.addf %12, %15 : vector<32x1xf32>
    %17 = math.rsqrt %16 : vector<32x1xf32>
    %18 = vector.broadcast %17 : vector<32x1xf32> to vector<32x64xf32>
    %19 = arith.mulf %14, %18 : vector<32x64xf32>
    %c0_5 = arith.constant 0 : index
    %c0_6 = arith.constant 0 : index
    %20 = vector.load %arg2[%c0_5, %c0_6] : memref<1x64xf32, #tpu.memory_space<vmem>>, vector<1x64xf32>
    %21 = vector.broadcast %20 : vector<1x64xf32> to vector<32x64xf32>
    %22 = arith.mulf %19, %21 : vector<32x64xf32>
    %c0_7 = arith.constant 0 : index
    %c0_8 = arith.constant 0 : index
    %23 = vector.load %arg3[%c0_7, %c0_8] : memref<1x64xf32, #tpu.memory_space<vmem>>, vector<1x64xf32>
    %24 = vector.broadcast %23 : vector<1x64xf32> to vector<32x64xf32>
    %25 = arith.addf %22, %24 : vector<32x64xf32>
    %26 = arith.truncf %25 : vector<32x64xf32> to vector<32x64xbf16>
    %c0_9 = arith.constant 0 : index
    %c0_10 = arith.constant 0 : index
    %27 = vector.load %arg4[%c0_9, %c0_10] : memref<32x64xbf16, #tpu.memory_space<vmem>>, vector<32x64xbf16>
    tpu.vector_store %arg4[%c0_9, %c0_10], %26 {strides = array<i32>} : memref<32x64xbf16, #tpu.memory_space<vmem>>, vector<32x64xbf16>,
    return
  }
  func.func @transform_0(%arg0: i32) -> (i32, i32) {
    %c0_i32 = arith.constant 0 : i32
    %c0_i32_0 = arith.constant 0 : i32
    return %arg0, %c0_i32 : i32, i32
  }
  func.func @transform_1(%arg0: i32) -> (i32, i32) {
    %c0_i32 = arith.constant 0 : i32
    %c0_i32_0 = arith.constant 0 : i32
    %c0_i32_1 = arith.constant 0 : i32
    return %c0_i32, %c0_i32_0 : i32, i32
  }
  func.func @transform_2(%arg0: i32) -> (i32, i32) {
    %c0_i32 = arith.constant 0 : i32
    %c0_i32_0 = arith.constant 0 : i32
    %c0_i32_1 = arith.constant 0 : i32
    return %c0_i32, %c0_i32_0 : i32, i32
  }
  func.func @transform_3(%arg0: i32) -> (i32, i32) {
    %c0_i32 = arith.constant 0 : i32
    %c0_i32_0 = arith.constant 0 : i32
    return %arg0, %c0_i32 : i32, i32
  }
}

</mosaic_0001>

<bundles_post_ra>
// kernel: tpu_custom_call.1
= control target key start
LH: loop header
LB: loop body
LE: loop exit
PB: predicated region body
PF: predicated region fallthrough
CT: control target
= control target key end

     0   :  { %8 = vsyncpa [#allocation3], 0  ;;  %s280_s0 = inlined_call_operand.hbm [shape: bf16[32,64], index: 0, kind: input, shape index: {}]   ;;  %s281_s1 = inlined_call_operand.vmem [shape: f32[1,64], index: 1, kind: input, shape index: {}]   ;;  %s282_s2 = inlined_call_operand.vmem [shape: f32[1,64], index: 2, kind: input, shape index: {}]   ;;  %s283_s3 = inlined_call_operand.hbm [shape: bf16[32,64], index: 3, kind: output, shape index: {}]  }
   0x1   :  { %9 = vsyncpa [#allocation4], 0  ;;  %s226_s12 = smov [#allocation2]  }
   0x2   :  { %s15_s13 = sshll.u32 %s226_s12, 4  ;;  %s16_s13 = int_to_ptr.vmem [resolvable:$true] %s15_s13 }
   0x3   :  { %s190_s14 = scalar_lea.vmem %s16_s13, 256  ;;  %p195_p1 = scmp.lt.s32.totalorder %s16_s13, %s16_s13 }
   0x4   :  { %p191_p0 = scmp.ne.s32.totalorder %s16_s13, %s190_s14  ;;  %p196_p2 = scmp.lt.s32.totalorder %s190_s14, %s190_s14 }
   0x6   :  { %p197_p3 = por %p196_p2, %p195_p1 }
   0x8   :  { %p198_p4 = pnand %p197_p3, %p191_p0 }
   0xa   :  { %201 = shalt.err (!%p198_p4)
}
   0xb   :  { %s227_s15 = smov 64   ;;  %s228_s16 = smov 4  }
   0xc   :  { %21 = dma.hbm_to_vmem [thread:$0]  %s280_s0, 256, %s16_s13, [#allocation3], %s227_s15, %s227_s15, %s228_s16  }
   0xd   :  { %222 = dma.done.wait [#allocation3], 256  }
   0xe   :  { %223 = vsyncadd [#allocation3], 4294967040  ;;  %v162_v0 = vld [vmem:[#allocation2] sm:$0xff]   ;;  %vm37_vm0 = vcmask 523264   ;;  %v169_v1 = vld [vmem:[#allocation2 + $0x8] sm:$0xff]   ;;  %vm129_vm1 = vcmask 519168  }
   0xf   :  { %v163_v2 = vunpack.c.l.bf16 %v162_v0  ;;  %v167_v3 = vunpack.c.l.bf16 %v169_v1  ;;  %v164_v4 = vunpack.c.h.bf16 %v162_v0  ;;  %v168_v5 = vunpack.c.h.bf16 %v169_v1  ;;  %v151_v43 = vld [vmem:[%s281_s1] ss:$0 sm:$0xff]  ;;  %s229_s1 = smov [#allocation5]  }
  0x10   :  { %v152_v45 = vld [vmem:[%s282_s2] ss:$0 sm:$0xff]  ;;  %s139_s2 = sshll.u32 %s229_s1, 4  ;;  %s140_s2 = int_to_ptr.vmem [resolvable:$true] %s139_s2 }
  0x11   :  { %v38_v6 = vsel %vm37_vm0, %v163_v2, 0.0  ;;  %v44_v7 = vsel %vm37_vm0, %v167_v3, 0.0  ;;  %v41_v8 = vsel %vm37_vm0, %v164_v4, 0.0  ;;  %v47_v9 = vsel %vm37_vm0, %v168_v5, 0.0  ;;  %s202_s22 = scalar_lea.vmem %s140_s2, 256  ;;  %p207_p6 = scmp.lt.s32.totalorder %s140_s2, %s140_s2 }
  0x12   :  { %39 = vadd.xlane.f32.xlu0 %v38_v6  ;;  %45 = vadd.xlane.f32.xlu1 %v44_v7  ;;  %p203_p5 = scmp.ne.s32.totalorder %s140_s2, %s202_s22  ;;  %p208_p7 = scmp.lt.s32.totalorder %s202_s22, %s202_s22 }
  0x14   :  { %p209_p8 = por %p208_p7, %p207_p6 }
  0x16   :  { %42 = vadd.xlane.f32.xlu0 %v41_v8  ;;  %48 = vadd.xlane.f32.xlu1 %v47_v9  ;;  %p210_p9 = pnand %p209_p8, %p203_p5 }
  0x9b   :  { %v40_v10 = vpop.xlane.xlu0 %39  ;;  %v46_v11 = vpop.xlane.xlu1 %45 }
  0x9c   :  { %v51_v12 = vmul.f32 0.015625, %v40_v10  ;;  %v53_v13 = vmul.f32 0.015625, %v46_v11 }
  0x9e   :  { %v55_v14 = vsub.f32 %v163_v2, %v51_v12  ;;  %v57_v15 = vsub.f32 %v167_v3, %v53_v13 }
  0x9f   :  { %v43_v16 = vpop.xlane.xlu0 %42  ;;  %v49_v17 = vpop.xlane.xlu1 %48 }
  0xa0   :  { %v52_v18 = vmul.f32 0.015625, %v43_v16  ;;  %v54_v19 = vmul.f32 0.015625, %v49_v17  ;;  %v59_v20 = vmul.f32 %v55_v14, %v55_v14  ;;  %v61_v21 = vmul.f32 %v57_v15, %v57_v15 }
  0xa2   :  { %v56_v22 = vsub.f32 %v164_v4, %v52_v18  ;;  %v58_v23 = vsub.f32 %v168_v5, %v54_v19  ;;  %v63_v24 = vsel %vm37_vm0, %v59_v20, 0.0  ;;  %v69_v25 = vsel %vm37_vm0, %v61_v21, 0.0 }
  0xa3   :  { %64 = vadd.xlane.f32.xlu0 %v63_v24 }
  0xa4   :  { %v60_v26 = vmul.f32 %v56_v22, %v56_v22  ;;  %v62_v27 = vmul.f32 %v58_v23, %v58_v23 }
  0xa6   :  { %v66_v28 = vsel %vm37_vm0, %v60_v26, 0.0  ;;  %v72_v29 = vsel %vm37_vm0, %v62_v27, 0.0 }
  0xa7   :  { %70 = vadd.xlane.f32.xlu0 %v69_v25  ;;  %67 = vadd.xlane.f32.xlu1 %v66_v28 }
  0xab   :  { %73 = vadd.xlane.f32.xlu1 %v72_v29 }
 0x12c   :  { %v65_v30 = vpop.xlane.xlu0 %64 }
 0x12d   :  { %v75_v31 = vmul.f32 0.015625, %v65_v30 }
 0x12f   :  { %v79_v32 = vadd.f32 1e-12, %v75_v31 }
 0x130   :  { %v68_v33 = vpop.xlane.xlu1 %67  ;;  %v71_v34 = vpop.xlane.xlu0 %70 }
 0x131   :  { %174 = vrsqrt.f32 %v79_v32  ;;  %v76_v35 = vmul.f32 0.015625, %v68_v33  ;;  %v77_v36 = vmul.f32 0.015625, %v71_v34 }
 0x133   :  { %v80_v37 = vadd.f32 1e-12, %v76_v35  ;;  %v81_v38 = vadd.f32 1e-12, %v77_v36 }
 0x134   :  { %v74_v39 = vpop.xlane.xlu1 %73 }
 0x135   :  { %176 = vrsqrt.f32 %v80_v37  ;;  %v78_v40 = vmul.f32 0.015625, %v74_v39 }
 0x136   :  { %178 = vrsqrt.f32 %v81_v38 }
 0x137   :  { %v82_v41 = vadd.f32 1e-12, %v78_v40 }
 0x139   :  { %180 = vrsqrt.f32 %v82_v41 }
 0x13e   :  { %v175_v42 = vpop.eup %174 }
 0x13f   :  { %v87_v44 = vmul.f32 %v175_v42, %v55_v14 }
 0x141   :  { %v98_v46 = vmul.f32 %v151_v43, %v87_v44 }
 0x142   :  { %v177_v47 = vpop.eup %176 }
 0x143   :  { %v179_v48 = vpop.eup %178  ;;  %v88_v49 = vmul.f32 %v177_v47, %v56_v22  ;;  %v109_v50 = vadd.f32 %v152_v45, %v98_v46 }
 0x144   :  { %v89_v51 = vmul.f32 %v179_v48, %v57_v15 }
 0x145   :  { %v99_v52 = vmul.f32 %v151_v43, %v88_v49  ;;  %v157_v53 = vpack.c.bf16 %v109_v50, %v109_v50 }
 0x146   :  { %v181_v54 = vpop.eup %180  ;;  %v100_v55 = vmul.f32 %v151_v43, %v89_v51 }
 0x147   :  { %v90_v56 = vmul.f32 %v181_v54, %v58_v23  ;;  %v110_v57 = vadd.f32 %v152_v45, %v99_v52  ;;  %130 = vst.msk [vmem:[#allocation5] sm:$0xf] %vm129_vm1, %v157_v53 }
 0x148   :  { %v111_v58 = vadd.f32 %v152_v45, %v100_v55 }
 0x149   :  { %v101_v59 = vmul.f32 %v151_v43, %v90_v56  ;;  %v158_v60 = vpack.c.bf16 %v110_v57, %v110_v57 }
 0x14a   :  { %v159_v61 = vpack.c.bf16 %v111_v58, %v111_v58 }
 0x14b   :  { %v112_v62 = vadd.f32 %v152_v45, %v101_v59  ;;  %131 = vst.msk [vmem:[#allocation5 + $0x4] sm:$0xf] %vm129_vm1, %v158_v60 }
 0x14c   :  { %132 = vst.msk [vmem:[#allocation5 + $0x8] sm:$0xf] %vm129_vm1, %v159_v61 }
 0x14d   :  { %v160_v63 = vpack.c.bf16 %v112_v62, %v112_v62 }
 0x14f   :  { %133 = vst.msk [vmem:[#allocation5 + $0xc] sm:$0xf] %vm129_vm1, %v160_v63 }
 0x150   :  { %213 = shalt.err (!%p210_p9)
}
 0x151   :  { %145 = dma.vmem_to_hbm [thread:$0]  %s140_s2, 256, %s283_s3, [#allocation4], %s227_s15, %s227_s15, %s228_s16  }
 0x152   :  { %224 = dma.done.wait [#allocation4], 256  }
 0x153   :  { %225 = vsyncadd [#allocation4], 4294967040 }
 0x154   :  { %149 = vsyncpa [#allocation3], 1 }
 0x155   :  { %150 = vsyncpa [#allocation4], 1 }

</bundles_post_ra>
